<compile_context>
chip_gen: v6e
topology: v6e:2x2x1
jax: 0.10.0
libtpu: 0.0.40
codegen_flags: <defaults>
</compile_context>

<pallas_src>
import functools

import jax
import jax.numpy as jnp
from jax.experimental import pallas as pl
from jax.experimental.pallas import tpu as pltpu


def _round_up(x, m):
    return ((x + m - 1) // m) * m


def _pad2(x, rows, cols):
    return jnp.pad(x, ((0, rows - x.shape[0]), (0, cols - x.shape[1])))


def graphconv_kernel(adj_ref, src_ref, dst_ref, w1_ref, w2_ref, b_ref, out_ref, acc_ref):
    k = pl.program_id(1)

    @pl.when(k == 0)
    def _():
        acc_ref[...] = jnp.zeros_like(acc_ref)

    # Weighted neighbor aggregation: bf16 x bf16 on the MXU, f32 accumulation.
    acc_ref[...] += jnp.dot(adj_ref[...], src_ref[...],
                            preferred_element_type=jnp.float32)

    @pl.when(k == pl.num_programs(1) - 1)
    def _():
        # Epilogue (once per dst tile): Linear over concat([dstfeat, agg]) as two
        # small matmuls + bias, then ReLU. All in f32.
        out = (
            jnp.dot(dst_ref[...], w1_ref[...], preferred_element_type=jnp.float32)
            + jnp.dot(acc_ref[...], w2_ref[...], preferred_element_type=jnp.float32)
            + b_ref[...]
        )
        out_ref[...] = jnp.maximum(out, 0.0).astype(out_ref.dtype)


@functools.partial(jax.jit, static_argnames=("block_m", "block_k"))
def graph_conv_forward(adj, srcfeat, dstfeat, weight, bias, *, block_m=256, block_k=512):
    """adj: [N_dst, N_src] dense 'affine' edge weights (0 = no edge),
    srcfeat: [N_src, in_dim], dstfeat: [N_dst, in_dim],
    weight: [out_dim, 2*in_dim] (PyTorch Linear layout), bias: [out_dim]."""
    n_dst, n_src = adj.shape
    in_dim = srcfeat.shape[1]
    out_dim = weight.shape[0]

    # Tile sizes: sublane dim multiple of 16 (bf16 packing), lane dim multiple of 128.
    # Defaults (256 x 512 bf16) keep double-buffered VMEM usage ~2 MiB -> fits the
    # scoped-VMEM budget on v5e (16 MiB default) and v7x (64 MiB physical) alike.
    tm = min(block_m, _round_up(n_dst, 16))
    tk = min(block_k, _round_up(n_src, 128))
    n_dst_p = _round_up(n_dst, tm)
    n_src_p = _round_up(n_src, tk)
    in_p = _round_up(in_dim, 128)
    out_p = _round_up(out_dim, 128)

    # Pad + cast. Zero padding is exact: padded edges/features/weights contribute 0,
    # padded output rows/cols are sliced off below.
    adj_p = _pad2(adj, n_dst_p, n_src_p).astype(jnp.bfloat16)
    src_p = _pad2(srcfeat, n_src_p, in_p).astype(jnp.bfloat16)
    dst_p = _pad2(dstfeat, n_dst_p, in_p).astype(jnp.float32)

    wt = weight.T.astype(jnp.float32)        # [2*in_dim, out_dim]
    w1 = _pad2(wt[:in_dim], in_p, out_p)     # acts on dstfeat
    w2 = _pad2(wt[in_dim:], in_p, out_p)     # acts on aggregated features
    b2d = _pad2(bias.reshape(1, out_dim).astype(jnp.float32), 1, out_p)

    grid = (n_dst_p // tm, n_src_p // tk)

    flops = 2 * n_dst_p * n_src_p * in_p + 4 * n_dst_p * in_p * out_p
    bytes_accessed = (
        adj_p.size * 2 + src_p.size * 2 + dst_p.size * 4
        + (w1.size + w2.size + b2d.size) * 4 + n_dst_p * out_p * 4
    )

    out = pl.pallas_call(
        graphconv_kernel,
        out_shape=jax.ShapeDtypeStruct((n_dst_p, out_p), jnp.float32),
        grid_spec=pltpu.PrefetchScalarGridSpec(
            num_scalar_prefetch=0,
            grid=grid,
            in_specs=[
                pl.BlockSpec((tm, tk), lambda i, k: (i, k)),        # adjacency tile
                pl.BlockSpec((tk, in_p), lambda i, k: (k, 0)),      # srcfeat tile
                pl.BlockSpec((tm, in_p), lambda i, k: (i, 0)),      # dstfeat (resident over k)
                pl.BlockSpec((in_p, out_p), lambda i, k: (0, 0)),   # W1 (grid-invariant)
                pl.BlockSpec((in_p, out_p), lambda i, k: (0, 0)),   # W2 (grid-invariant)
                pl.BlockSpec((1, out_p), lambda i, k: (0, 0)),      # bias (grid-invariant)
            ],
            out_specs=pl.BlockSpec((tm, out_p), lambda i, k: (i, 0)),
            scratch_shapes=[pltpu.VMEM((tm, in_p), jnp.float32)],   # agg accumulator
        ),
        compiler_params=pltpu.CompilerParams(
            dimension_semantics=("parallel", "arbitrary"),
            vmem_limit_bytes=48 * 1024 * 1024,
        ),
        cost_estimate=pl.CostEstimate(
            flops=flops, transcendentals=0, bytes_accessed=bytes_accessed),
    )(adj_p, src_p, dst_p, w1, w2, b2d)

    return out[:n_dst, :out_dim]


def reference(adj, srcfeat, dstfeat, weight, bias):
    agg = adj @ srcfeat
    gcn_feat = jnp.concatenate([dstfeat, agg], axis=-1)
    out = gcn_feat @ weight.T + bias
    return jnp.maximum(out.reshape(out.shape[0], -1), 0.0)


if __name__ == "__main__":
    key = jax.random.PRNGKey(0)
    k_adj, k_mask, k_feat, k_w, k_b = jax.random.split(key, 5)

    # Small synthetic bipartite graph; block_m=128 / block_k=256 gives a (2, 3) grid
    # (padded 256 x 768) so the parallel + reduction pipeline paths are exercised.
    n_src, n_dst = 640, 192          # dst nodes are the first n_dst src nodes
    in_dim, out_dim = 32, 64

    # Dense adjacency with 'affine' edge weights; ~25% edge density.
    affine = jax.random.uniform(k_adj, (n_dst, n_src), dtype=jnp.float32)
    mask = (jax.random.uniform(k_mask, (n_dst, n_src)) < 0.25).astype(jnp.float32)
    adj = affine * mask

    # Node features; dstfeat = srcfeat[:num_dst_nodes] as in the PyTorch code.
    srcfeat = jax.random.normal(k_feat, (n_src, in_dim), dtype=jnp.float32)
    dstfeat = srcfeat[:n_dst]

    # Deterministic Linear(in_dim*2, out_dim) parameters (synthetic init).
    bound = 1.0 / jnp.sqrt(2.0 * in_dim)
    weight = jax.random.uniform(k_w, (out_dim, 2 * in_dim), jnp.float32, -bound, bound)
    bias = jax.random.uniform(k_b, (out_dim,), jnp.float32, -bound, bound)

    out = graph_conv_forward(adj, srcfeat, dstfeat, weight, bias,
                             block_m=128, block_k=256)
    out = jax.block_until_ready(out)
    assert out.shape == (n_dst, out_dim), out.shape

    # Tight check against a reference fed the same bf16-quantized adj/srcfeat
    # (isolates the kernel's f32 accumulation from the deliberate bf16 input cast).
    adj_q = adj.astype(jnp.bfloat16).astype(jnp.float32)
    src_q = srcfeat.astype(jnp.bfloat16).astype(jnp.float32)
    ref_q = reference(adj_q, src_q, dstfeat, weight, bias)
    assert jnp.allclose(out, ref_q, atol=1e-3, rtol=1e-3), \
        float(jnp.max(jnp.abs(out - ref_q)))

    # Loose check against the pure-f32 module semantics (bf16 input quantization noise).
    ref_f = reference(adj, srcfeat, dstfeat, weight, bias)
    assert jnp.allclose(out, ref_f, atol=5e-2, rtol=5e-2), \
        float(jnp.max(jnp.abs(out - ref_f)))

    print("KERNEL_OK")
</pallas_src>

<mosaic_0001>
module attributes {stable_mosaic.version = 11 : i64} {
  func.func @graphconv_kernel(%arg0: i32, %arg1: i32, %arg2: memref<128x256xbf16, #tpu.memory_space<vmem>>, %arg3: memref<256x128xbf16, #tpu.memory_space<vmem>>, %arg4: memref<128x128xf32, #tpu.memory_space<vmem>>, %arg5: memref<128x128xf32, #tpu.memory_space<vmem>>, %arg6: memref<128x128xf32, #tpu.memory_space<vmem>>, %arg7: memref<1x128xf32, #tpu.memory_space<vmem>>, %arg8: memref<128x128xf32, #tpu.memory_space<vmem>>, %arg9: memref<128x128xf32, #tpu.memory_space<vmem>>) attributes {dimension_semantics = [#tpu.dimension_semantics<parallel>, #tpu.dimension_semantics<arbitrary>], iteration_bounds = array<i64: 2, 3>, scalar_prefetch = 0 : i64, scratch_operands = 1 : i64, tpu.core_type = #tpu.core_type<tc>, window_params = [{transform_indices = @transform_0, window_bounds = array<i64: 128, 256>}, {transform_indices = @transform_1, window_bounds = array<i64: 256, 128>}, {transform_indices = @transform_2, window_bounds = array<i64: 128, 128>}, {pipeline_mode = #tpu.pipeline_mode<synchronous>, transform_indices = @transform_3, window_bounds = array<i64: 128, 128>}, {pipeline_mode = #tpu.pipeline_mode<synchronous>, transform_indices = @transform_4, window_bounds = array<i64: 128, 128>}, {pipeline_mode = #tpu.pipeline_mode<synchronous>, transform_indices = @transform_5, window_bounds = array<i64: 1, 128>}, {transform_indices = @transform_6, window_bounds = array<i64: 128, 128>}]} {
    %c0_i32 = arith.constant 0 : i32
    %0 = arith.cmpi eq, %arg1, %c0_i32 : i32
    %1 = arith.extui %0 : i1 to i32
    %c0_i32_0 = arith.constant 0 : i32
    %2 = arith.cmpi ne, %1, %c0_i32_0 : i32
    scf.if %2 {
      %cst_9 = arith.constant 0.000000e+00 : f32
      %12 = vector.broadcast %cst_9 : f32 to vector<128x128xf32>
      %c0_10 = arith.constant 0 : index
      %c0_11 = arith.constant 0 : index
      %13 = vector.load %arg9[%c0_10, %c0_11] : memref<128x128xf32, #tpu.memory_space<vmem>>, vector<128x128xf32>
      tpu.vector_store %arg9[%c0_10, %c0_11], %12 {strides = array<i32>} : memref<128x128xf32, #tpu.memory_space<vmem>>, vector<128x128xf32>,
    } else {
    }
    %c0 = arith.constant 0 : index
    %c0_1 = arith.constant 0 : index
    %3 = vector.load %arg9[%c0, %c0_1] : memref<128x128xf32, #tpu.memory_space<vmem>>, vector<128x128xf32>
    %c0_2 = arith.constant 0 : index
    %c0_3 = arith.constant 0 : index
    %4 = vector.load %arg2[%c0_2, %c0_3] : memref<128x256xbf16, #tpu.memory_space<vmem>>, vector<128x256xbf16>
    %c0_4 = arith.constant 0 : index
    %c0_5 = arith.constant 0 : index
    %5 = vector.load %arg3[%c0_4, %c0_5] : memref<256x128xbf16, #tpu.memory_space<vmem>>, vector<256x128xbf16>
    %cst = arith.constant dense<0.000000e+00> : vector<128x128xf32>
    %6 = tpu.matmul %4, %5, %cst {dimension_numbers = #tpu.dot_dimension_numbers<[1], [0], [0], [1], [0, 0, 1, 1], [], []>} : vector<128x256xbf16>, vector<256x128xbf16>, vector<128x128xf32> -> vector<128x128xf32>
    %7 = arith.addf %3, %6 : vector<128x128xf32>
    %c0_6 = arith.constant 0 : index
    %c0_7 = arith.constant 0 : index
    %8 = vector.load %arg9[%c0_6, %c0_7] : memref<128x128xf32, #tpu.memory_space<vmem>>, vector<128x128xf32>
    tpu.vector_store %arg9[%c0_6, %c0_7], %7 {strides = array<i32>} : memref<128x128xf32, #tpu.memory_space<vmem>>, vector<128x128xf32>,
    %c2_i32 = arith.constant 2 : i32
    %9 = arith.cmpi eq, %arg1, %c2_i32 : i32
    %10 = arith.extui %9 : i1 to i32
    %c0_i32_8 = arith.constant 0 : i32
    %11 = arith.cmpi ne, %10, %c0_i32_8 : i32
    scf.if %11 {
      %c0_9 = arith.constant 0 : index
      %c0_10 = arith.constant 0 : index
      %12 = vector.load %arg4[%c0_9, %c0_10] : memref<128x128xf32, #tpu.memory_space<vmem>>, vector<128x128xf32>
      %c0_11 = arith.constant 0 : index
      %c0_12 = arith.constant 0 : index
      %13 = vector.load %arg5[%c0_11, %c0_12] : memref<128x128xf32, #tpu.memory_space<vmem>>, vector<128x128xf32>
      %cst_13 = arith.constant dense<0.000000e+00> : vector<128x128xf32>
      %14 = tpu.matmul %12, %13, %cst_13 {dimension_numbers = #tpu.dot_dimension_numbers<[1], [0], [0], [1], [0, 0, 1, 1], [], []>} : vector<128x128xf32>, vector<128x128xf32>, vector<128x128xf32> -> vector<128x128xf32>
      %c0_14 = arith.constant 0 : index
      %c0_15 = arith.constant 0 : index
      %15 = vector.load %arg9[%c0_14, %c0_15] : memref<128x128xf32, #tpu.memory_space<vmem>>, vector<128x128xf32>
      %c0_16 = arith.constant 0 : index
      %c0_17 = arith.constant 0 : index
      %16 = vector.load %arg6[%c0_16, %c0_17] : memref<128x128xf32, #tpu.memory_space<vmem>>, vector<128x128xf32>
      %cst_18 = arith.constant dense<0.000000e+00> : vector<128x128xf32>
      %17 = tpu.matmul %15, %16, %cst_18 {dimension_numbers = #tpu.dot_dimension_numbers<[1], [0], [0], [1], [0, 0, 1, 1], [], []>} : vector<128x128xf32>, vector<128x128xf32>, vector<128x128xf32> -> vector<128x128xf32>
      %18 = arith.addf %14, %17 : vector<128x128xf32>
      %c0_19 = arith.constant 0 : index
      %c0_20 = arith.constant 0 : index
      %19 = vector.load %arg7[%c0_19, %c0_20] : memref<1x128xf32, #tpu.memory_space<vmem>>, vector<1x128xf32>
      %20 = vector.broadcast %19 : vector<1x128xf32> to vector<128x128xf32>
      %21 = arith.addf %18, %20 : vector<128x128xf32>
      %cst_21 = arith.constant 0.000000e+00 : f32
      %22 = vector.broadcast %cst_21 : f32 to vector<128x128xf32>
      %23 = arith.maximumf %21, %22 : vector<128x128xf32>
      %c0_22 = arith.constant 0 : index
      %c0_23 = arith.constant 0 : index
      %24 = vector.load %arg8[%c0_22, %c0_23] : memref<128x128xf32, #tpu.memory_space<vmem>>, vector<128x128xf32>
      tpu.vector_store %arg8[%c0_22, %c0_23], %23 {strides = array<i32>} : memref<128x128xf32, #tpu.memory_space<vmem>>, vector<128x128xf32>,
    } else {
    }
    return
  }
  func.func @transform_0(%arg0: i32, %arg1: i32) -> (i32, i32) {
    %c0_i32 = arith.constant 0 : i32
    return %arg0, %arg1 : i32, i32
  }
  func.func @transform_1(%arg0: i32, %arg1: i32) -> (i32, i32) {
    %c0_i32 = arith.constant 0 : i32
    %c0_i32_0 = arith.constant 0 : i32
    return %arg1, %c0_i32 : i32, i32
  }
  func.func @transform_2(%arg0: i32, %arg1: i32) -> (i32, i32) {
    %c0_i32 = arith.constant 0 : i32
    %c0_i32_0 = arith.constant 0 : i32
    return %arg0, %c0_i32 : i32, i32
  }
  func.func @transform_3(%arg0: i32, %arg1: i32) -> (i32, i32) {
    %c0_i32 = arith.constant 0 : i32
    %c0_i32_0 = arith.constant 0 : i32
    %c0_i32_1 = arith.constant 0 : i32
    return %c0_i32, %c0_i32_0 : i32, i32
  }
  func.func @transform_4(%arg0: i32, %arg1: i32) -> (i32, i32) {
    %c0_i32 = arith.constant 0 : i32
    %c0_i32_0 = arith.constant 0 : i32
    %c0_i32_1 = arith.constant 0 : i32
    return %c0_i32, %c0_i32_0 : i32, i32
  }
  func.func @transform_5(%arg0: i32, %arg1: i32) -> (i32, i32) {
    %c0_i32 = arith.constant 0 : i32
    %c0_i32_0 = arith.constant 0 : i32
    %c0_i32_1 = arith.constant 0 : i32
    return %c0_i32, %c0_i32_0 : i32, i32
  }
  func.func @transform_6(%arg0: i32, %arg1: i32) -> (i32, i32) {
    %c0_i32 = arith.constant 0 : i32
    %c0_i32_0 = arith.constant 0 : i32
    return %arg0, %c0_i32 : i32, i32
  }
}

</mosaic_0001>

<bundles_post_ra>
// kernel: graph_conv_forward.1
= control target key start
LH: loop header
LB: loop body
LE: loop exit
PB: predicated region body
PF: predicated region fallthrough
CT: control target
= control target key end

     0   :  { %s1816_s21 = smov 0   ;;  %s1818_s22 = smov 0   ;;  %s2120_s0 = inlined_call_operand.vmem [shape: bf16[256,768], index: 0, kind: input, shape index: {}]   ;;  %s2121_s1 = inlined_call_operand.vmem [shape: bf16[768,128], index: 1, kind: input, shape index: {}]   ;;  %s2122_s2 = inlined_call_operand.vmem [shape: f32[256,128], index: 2, kind: input, shape index: {}]   ;;  %s2123_s3 = inlined_call_operand.vmem [shape: f32[128,128], index: 3, kind: input, shape index: {}]   ;;  %s2124_s4 = inlined_call_operand.vmem [shape: f32[128,128], index: 4, kind: input, shape index: {}]   ;;  %s2125_s5 = inlined_call_operand.vmem [shape: f32[1,128], index: 5, kind: input, shape index: {}]   ;;  %s2126_s6 = inlined_call_operand.vmem [shape: f32[256,128], index: 6, kind: output, shape index: {}]  }
   0x1   :  { %s1820_s23 = smov 0   ;;  %s1822_s24 = smov 0  }
   0x2   :  { %s1824_s25 = smov 0   ;;  %s1826_s26 = smov 0  }
   0x3   :  { %s1828_s27 = smov 0  }
   0x4 LB: > { %s25_s28 = sadd.s32 1, %s1770_s25  ;;  %s28_s29 = sadd.s32 1, %s1774_s26  ;;  %s1778_s27 = sphi %s1828_s27, %s16_s27   ;;  %s1774_s26 = sphi %s1826_s26, %s2132_s26   ;;  %s1770_s25 = sphi %s1824_s25, %s2131_s25   ;;  %s1766_s24 = sphi %s1822_s24, %s2130_s24   ;;  %s1762_s23 = sphi %s1820_s23, %s2129_s23   ;;  %s1758_s22 = sphi %s1818_s22, %s2128_s22   ;;  %s1754_s21 = sphi %s1816_s21, %s2127_s21  }
   0x5   : > { %p26_p0 = scmp.ge.s32.totalorder %s25_s28, 3  ;;  %p44_p1 = scmp.ne.s32.totalorder %s1758_s22, %s1754_s21 }
   0x6   : > { %p45_p2 = scmp.eq.s32.totalorder %s1778_s27, 0  ;;  %s37_s9 = sadd.s32 1, %s1758_s22 }
   0x7   : > { %s2134_s28 = smov (%p26_p0, %s25_s28), 0  ;;  %s2136_s29 = smov (!%p26_p0, %s28_s29), %s1774_s26 }
   0x8   : > { %p46_p3 = por %p45_p2, %p44_p1  ;;  %p30_p4 = scmp.ge.s32.totalorder %s2136_s29, 2 }
   0x9   : > { %s33_s30 = ssub.s32 %s1770_s25, %s2134_s28  ;;  %p1319_p6 = scmp.ge.s32.totalorder %s1778_s27, 6 }
   0xa   : > { %s2138_s29 = smov (%p30_p4, %s2136_s29), 0 }
   0xb   : > { %s32_s7 = ssub.s32 %s1774_s26, %s2138_s29  ;;  %220 = sbr.rel (%p1319_p6) target bundleno = 32 (0x20), region = 28 }
   0xc   : > { %s34_s8 = sor.u32 %s33_s30, %s32_s7 }
   0xd   : > { %p35_p5 = scmp.eq.s32.totalorder %s34_s8, 0 }
   0xf   : > { %s1867_s10 = scalar_select %p35_p5, %s1758_s22, %s37_s9  }
  0x10   : > { %223 = sbr.rel (!%p46_p3) target bundleno = 32 (0x20), region = 32  ;;  %s225_s11 = sand.u32 (%p46_p3), 1, %s1758_s22  }
  0x11   : > { %s1322_s12 = sshll.u32 (%p46_p3), %s1770_s25, 1  ;;  %s1320_s13 = sshll.u32 (%p46_p3), %s225_s11, 7 }
  0x12   : > { %s1626_s14 = smul.u32 (%p46_p3), 96, %s1774_s26  ;;  %s227_s20 = scalar_lea.vmem (%p46_p3), [#allocation3], %s1320_s13 }
  0x14   : > { %s231_s15 = sadd.s32 (%p46_p3), %s1626_s14, %s1322_s12 }
  0x15   : > { %s1324_s16 = sshll.u32 %s231_s15, 2 }
  0x16   : > { %s1876_s19 = scalar_lea.vmem %s2120_s0, %s1324_s16 }
  0x17   : > { %v292_v0 = vld [vmem:[%s1876_s19] sm:$0xff]  ;;  %v294_v1 = vld [vmem:[%s1876_s19 + $0x18] sm:$0xff]  ;;  %v296_v2 = vld [vmem:[%s1876_s19 + $0x30] sm:$0xff] }
  0x18   : > { %293 = vst [vmem:[%s227_s20] sm:$0xff] %v292_v0  ;;  %295 = vst [vmem:[%s227_s20 + $0x8] sm:$0xff] %v294_v1  ;;  %v298_v3 = vld [vmem:[%s1876_s19 + $0x48] sm:$0xff]  ;;  %v300_v4 = vld [vmem:[%s1876_s19 + $0x60] sm:$0xff] }
  0x19   : > { %297 = vst [vmem:[%s227_s20 + $0x10] sm:$0xff] %v296_v2  ;;  %v302_v5 = vld [vmem:[%s1876_s19 + $0x78] sm:$0xff]  ;;  %299 = vst [vmem:[%s227_s20 + $0x18] sm:$0xff] %v298_v3  ;;  %v304_v6 = vld [vmem:[%s1876_s19 + $0x90] sm:$0xff] }
  0x1a   : > { %301 = vst [vmem:[%s227_s20 + $0x20] sm:$0xff] %v300_v4  ;;  %303 = vst [vmem:[%s227_s20 + $0x28] sm:$0xff] %v302_v5  ;;  %v306_v7 = vld [vmem:[%s1876_s19 + $0xa8] sm:$0xff]  ;;  %v308_v8 = vld [vmem:[%s1876_s19 + $0xc0] sm:$0xff] }
  0x1b   : > { %305 = vst [vmem:[%s227_s20 + $0x30] sm:$0xff] %v304_v6  ;;  %307 = vst [vmem:[%s227_s20 + $0x38] sm:$0xff] %v306_v7  ;;  %v310_v9 = vld [vmem:[%s1876_s19 + $0xd8] sm:$0xff]  ;;  %v312_v10 = vld [vmem:[%s1876_s19 + $0xf0] sm:$0xff] }
  0x1c   : > { %309 = vst [vmem:[%s227_s20 + $0x40] sm:$0xff] %v308_v8  ;;  %v314_v11 = vld [vmem:[%s1876_s19 + $0x108] sm:$0xff]  ;;  %311 = vst [vmem:[%s227_s20 + $0x48] sm:$0xff] %v310_v9  ;;  %v316_v12 = vld [vmem:[%s1876_s19 + $0x120] sm:$0xff] }
  0x1d   : > { %313 = vst [vmem:[%s227_s20 + $0x50] sm:$0xff] %v312_v10  ;;  %315 = vst [vmem:[%s227_s20 + $0x58] sm:$0xff] %v314_v11  ;;  %v318_v13 = vld [vmem:[%s1876_s19 + $0x138] sm:$0xff]  ;;  %v320_v14 = vld [vmem:[%s1876_s19 + $0x150] sm:$0xff] }
  0x1e   : > { %317 = vst [vmem:[%s227_s20 + $0x60] sm:$0xff] %v316_v12  ;;  %319 = vst [vmem:[%s227_s20 + $0x68] sm:$0xff] %v318_v13  ;;  %v322_v15 = vld [vmem:[%s1876_s19 + $0x168] sm:$0xff] }
  0x1f   : > { %321 = vst [vmem:[%s227_s20 + $0x70] sm:$0xff] %v320_v14  ;;  %323 = vst [vmem:[%s227_s20 + $0x78] sm:$0xff] %v322_v15 }
  0x20 PF: > { %p1325_p7 = scmp.ge.s32.totalorder %s1778_s27, 1  ;;  %p346_p8 = scmp.lt.s32.totalorder %s1778_s27, 7 }
  0x22   : > { %p347_p9 = pnand %p1325_p7, %p346_p8 }
  0x23   : > { %s353_s30 = sand.u32 (!%p347_p9), 1, %s1754_s21   ;;  %s1327_s7 = sshll.u32 (!%p347_p9), %s1762_s23, 5 }
  0x24   : > { %350 = sbr.rel (%p347_p9) target bundleno = 584 (0x248), region = 78  ;;  %s1326_s8 = sshll.u32 (!%p347_p9), %s353_s30, 7 }
  0x25   : > { %p395_p10 = scmp.lt.s32.totalorder (!%p347_p9), %s1327_s7, 95  ;;  %s1329_s9 = sshll.u32 (!%p347_p9), %s1766_s24, 4 }
  0x26   : > { %p401_p11 = scmp.lt.s32.totalorder (!%p347_p9), %s1329_s9, 31  ;;  %s1914_s24 = scalar_lea.vmem (!%p347_p9), [#allocation3], %s1326_s8 }
  0x27   : > { %p1333_p12 = scmp.ne.s32.totalorder (!%p347_p9), %s1762_s23, 0 }
  0x29   : > { %s2140_s7 = smov (!%p395_p10, %s1327_s7), 95  ;;  %s2142_s9 = smov (!%p401_p11, %s1329_s9), 31 }
  0x2a   : > { %s1328_s11 = sshll.u32 %s2140_s7, 2  ;;  %s1330_s15 = sshll.u32 %s2142_s9, 3 }
  0x2b   : > { %s1902_s14 = scalar_lea.vmem %s2121_s1, %s1328_s11  ;;  %s1907_s18 = scalar_lea.vmem %s2122_s2, %s1330_s15 }
  0x2c   : > { %s1912_s20 = scalar_lea.vmem %s2126_s6, %s1330_s15  ;;  %416 = sbr.rel (%p1333_p12) target bundleno = 58 (0x3a), region = 86 }
  0x31   : > { %v1780_v16 = vmov 0.0  }
  0x32   : > { %417 = vst [vmem:[#allocation2 + $0x30] sm:$0xff] %v1780_v16  ;;  %418 = vst [vmem:[#allocation2] sm:$0xff] %v1780_v16 }
  0x33   : > { %419 = vst [vmem:[#allocation2 + $0x58] sm:$0xff] %v1780_v16  ;;  %420 = vst [vmem:[#allocation2 + $0x18] sm:$0xff] %v1780_v16 }
  0x34   : > { %421 = vst [vmem:[#allocation2 + $0x50] sm:$0xff] %v1780_v16  ;;  %422 = vst [vmem:[#allocation2 + $0x68] sm:$0xff] %v1780_v16 }
  0x35   : > { %423 = vst [vmem:[#allocation2 + $0x8] sm:$0xff] %v1780_v16  ;;  %424 = vst [vmem:[#allocation2 + $0x48] sm:$0xff] %v1780_v16 }
  0x36   : > { %425 = vst [vmem:[#allocation2 + $0x40] sm:$0xff] %v1780_v16  ;;  %426 = vst [vmem:[#allocation2 + $0x20] sm:$0xff] %v1780_v16 }
  0x37   : > { %427 = vst [vmem:[#allocation2 + $0x10] sm:$0xff] %v1780_v16  ;;  %428 = vst [vmem:[#allocation2 + $0x38] sm:$0xff] %v1780_v16 }
  0x38   : > { %429 = vst [vmem:[#allocation2 + $0x60] sm:$0xff] %v1780_v16  ;;  %430 = vst [vmem:[#allocation2 + $0x70] sm:$0xff] %v1780_v16 }
  0x39   : > { %431 = vst [vmem:[#allocation2 + $0x78] sm:$0xff] %v1780_v16  ;;  %432 = vst [vmem:[#allocation2 + $0x28] sm:$0xff] %v1780_v16 }
  0x3a PF: > { %v1684_v17 = vld [vmem:[%s1902_s14 + $0x78] sm:$0xff]   ;;  %v1686_v19 = vld [vmem:[%s1902_s14 + $0x70] sm:$0xff]   ;;  %v1688_v21 = vld [vmem:[%s1902_s14 + $0x68] sm:$0xff]   ;;  %p1366_p13 = scmp.ne.s32.totalorder %s1762_s23, 2 }
  0x3b   : > { %v1685_v18 = vld [vmem:[%s1902_s14 + $0x38] sm:$0xff]   ;;  %1370 = vmatprep.subr.bf16.mxu0 %v1684_v17  ;;  %1610 = vmatprep.subr.bf16.mxu1 %v1684_v17  ;;  %v1687_v20 = vld [vmem:[%s1902_s14 + $0x30] sm:$0xff]   ;;  %v1689_v22 = vld [vmem:[%s1902_s14 + $0x28] sm:$0xff]  }
  0x3c   : > { %1371 = vmatpush3.bf16.msra.mxu0 %v1685_v18  ;;  %1618 = vmatpush3.bf16.msra.mxu1 %v1685_v18  ;;  %v1690_v23 = vld [vmem:[%s1902_s14 + $0x60] sm:$0xff]   ;;  %v1692_v25 = vld [vmem:[%s1902_s14 + $0x58] sm:$0xff]   ;;  %v1694_v27 = vld [vmem:[%s1902_s14 + $0x50] sm:$0xff]  }
  0x3d   : > { %1372 = vmatprep.subr.bf16.mxu0 %v1686_v19  ;;  %1611 = vmatprep.subr.bf16.mxu1 %v1686_v19  ;;  %v1691_v24 = vld [vmem:[%s1902_s14 + $0x20] sm:$0xff]   ;;  %v1693_v26 = vld [vmem:[%s1902_s14 + $0x18] sm:$0xff]   ;;  %v1695_v30 = vld [vmem:[%s1902_s14 + $0x10] sm:$0xff]  }
  0x3e   : > { %v1702_v28 = vld [vmem:[%s1914_s24 + $0x4] ss:$8 sps:$4 sm:$0xff]   ;;  %v1700_v35 = vld [vmem:[%s1914_s24] ss:$8 sps:$4 sm:$0xff]   ;;  %v1706_v37 = vld [vmem:[%s1914_s24 + $0x14] ss:$8 sps:$4 sm:$0xff]  }
  0x3f   : > { %v1705_v29 = vld [vmem:[%s1914_s24 + $0x44] ss:$8 sps:$4 sm:$0xff]   ;;  %705 = vmatprep.mubr.bf16.mxu0 %v1702_v28  ;;  %v1703_v36 = vld [vmem:[%s1914_s24 + $0x40] ss:$8 sps:$4 sm:$0xff]   ;;  %v1708_v38 = vld [vmem:[%s1914_s24 + $0x54] ss:$8 sps:$4 sm:$0xff]  }
  0x40   : > { %1373 = vmatpush3.bf16.msra.mxu0 %v1687_v20  ;;  %1619 = vmatpush3.bf16.msra.mxu1 %v1687_v20  ;;  %v1696_v31 = vld [vmem:[%s1902_s14 + $0x48] sm:$0xff]   ;;  %v1698_v33 = vld [vmem:[%s1902_s14 + $0x40] sm:$0xff]   ;;  %v1710_v39 = vld [vmem:[%s1914_s24 + $0x10] ss:$8 sps:$4 sm:$0xff]  }
  0x41   : > { %1374 = vmatprep.subr.bf16.mxu0 %v1688_v21  ;;  %1612 = vmatprep.subr.bf16.mxu1 %v1688_v21  ;;  %v1697_v32 = vld [vmem:[%s1902_s14 + $0x8] sm:$0xff]   ;;  %v1699_v34 = vld [vmem:[%s1902_s14] sm:$0xff]   ;;  %v1711_v40 = vld [vmem:[%s1914_s24 + $0x50] ss:$8 sps:$4 sm:$0xff]  }
  0x42   : > { %737 = vmatprep.mubr.bf16.mxu1 %v1705_v29  ;;  %v1712_v41 = vld [vmem:[%s1914_s24 + $0x24] ss:$8 sps:$4 sm:$0xff]   ;;  %v1716_v43 = vld [vmem:[%s1914_s24 + $0x20] ss:$8 sps:$4 sm:$0xff]   ;;  %v1718_v45 = vld [vmem:[%s1914_s24 + $0x34] ss:$8 sps:$4 sm:$0xff]  }
  0x43   : > { %v1714_v42 = vld [vmem:[%s1914_s24 + $0x64] ss:$8 sps:$4 sm:$0xff]   ;;  %v1717_v44 = vld [vmem:[%s1914_s24 + $0x60] ss:$8 sps:$4 sm:$0xff]   ;;  %v1720_v46 = vld [vmem:[%s1914_s24 + $0x74] ss:$8 sps:$4 sm:$0xff]  }
  0x44   : > { %1375 = vmatpush3.bf16.msra.mxu0 %v1689_v22  ;;  %1620 = vmatpush3.bf16.msra.mxu1 %v1689_v22  ;;  %v1722_v47 = vld [vmem:[%s1914_s24 + $0x30] ss:$8 sps:$4 sm:$0xff]   ;;  %v441_v53 = vld [vmem:[#allocation2 + $0x40] sm:$0xff] }
  0x45   : > { %1376 = vmatprep.subr.bf16.mxu0 %v1690_v23  ;;  %1613 = vmatprep.subr.bf16.mxu1 %v1690_v23  ;;  %v1723_v48 = vld [vmem:[%s1914_s24 + $0x70] ss:$8 sps:$4 sm:$0xff]   ;;  %v434_v61 = vld [vmem:[#allocation2] sm:$0xff] }
  0x46   : > { %v433_v51 = vld [vmem:[#allocation2 + $0x30] sm:$0xff]  ;;  %v442_v63 = vld [vmem:[#allocation2 + $0x20] sm:$0xff]  ;;  %v435_v7 = vld [vmem:[#allocation2 + $0x58] sm:$0xff] }
  0x47   : > { %v443_v9 = vld [vmem:[#allocation2 + $0x10] sm:$0xff]  ;;  %v436_v17 = vld [vmem:[#allocation2 + $0x18] sm:$0xff]  ;;  %v445_v29 = vld [vmem:[#allocation2 + $0x60] sm:$0xff] }
  0x48   : > { %1377 = vmatpush3.bf16.msra.mxu0 %v1691_v24  ;;  %1621 = vmatpush3.bf16.msra.mxu1 %v1691_v24  ;;  %v444_v19 = vld [vmem:[#allocation2 + $0x38] sm:$0xff] }
  0x49   : > { %1378 = vmatprep.subr.bf16.mxu0 %v1692_v25  ;;  %1614 = vmatprep.subr.bf16.mxu1 %v1692_v25 }
  0x4c   : > { %1379 = vmatpush3.bf16.msra.mxu0 %v1693_v26  ;;  %1622 = vmatpush3.bf16.msra.mxu1 %v1693_v26 }
  0x4d   : > { %1380 = vmatprep.subr.bf16.mxu0 %v1694_v27  ;;  %1615 = vmatprep.subr.bf16.mxu1 %v1694_v27  ;;  %v437_v27 = vld [vmem:[#allocation2 + $0x50] sm:$0xff] }
  0x50   : > { %1381 = vmatpush3.bf16.msra.mxu0 %v1695_v30  ;;  %1623 = vmatpush3.bf16.msra.mxu1 %v1695_v30 }
  0x51   : > { %1382 = vmatprep.subr.bf16.mxu0 %v1696_v31  ;;  %1616 = vmatprep.subr.bf16.mxu1 %v1696_v31 }
  0x54   : > { %1383 = vmatpush3.bf16.msra.mxu0 %v1697_v32  ;;  %1624 = vmatpush3.bf16.msra.mxu1 %v1697_v32 }
  0x55   : > { %1384 = vmatprep.subr.bf16.mxu0 %v1698_v33  ;;  %1617 = vmatprep.subr.bf16.mxu1 %v1698_v33 }
  0x58   : > { %1385 = vmatpush3.bf16.msra.mxu0 %v1699_v34  ;;  %1625 = vmatpush3.bf16.msra.mxu1 %v1699_v34 }
  0x5b   : > { %706 = vmatmul.mubr.bf16.vlgmr.msra.gmra.mxu0 %v1700_v35  ;;  %738 = vmatmul.mubr.bf16.vlgmr.msra.gmra.mxu1 %v1703_v36 }
  0x5c   : > { %713 = vmatprep.mubr.bf16.mxu0 %v1706_v37  ;;  %745 = vmatprep.mubr.bf16.mxu1 %v1708_v38  ;;  %v438_v37 = vld [vmem:[#allocation2 + $0x68] sm:$0xff] }
  0x63   : > { %714 = vmatmul.mubr.bf16.gmra.mxu0 %v1710_v39  ;;  %746 = vmatmul.mubr.bf16.gmra.mxu1 %v1711_v40  ;;  %v446_v39 = vld [vmem:[#allocation2 + $0x70] sm:$0xff] }
  0x64   : > { %721 = vmatprep.mubr.bf16.mxu0 %v1712_v41  ;;  %753 = vmatprep.mubr.bf16.mxu1 %v1714_v42 }
  0x6b   : > { %722 = vmatmul.mubr.bf16.gmra.mxu0 %v1716_v43  ;;  %754 = vmatmul.mubr.bf16.gmra.mxu1 %v1717_v44 }
  0x6c   : > { %729 = vmatprep.mubr.bf16.mxu0 %v1718_v45  ;;  %761 = vmatprep.mubr.bf16.mxu1 %v1720_v46 }
  0x73   : > { %730 = vmatmul.mubr.bf16.gmra.mxu0 %v1722_v47  ;;  %762 = vmatmul.mubr.bf16.gmra.mxu1 %v1723_v48  ;;  %v439_v47 = vld [vmem:[#allocation2 + $0x8] sm:$0xff] }
 0x11b   : > { %v1386_v49 = vpop.f32.mrf.mxu0  ;;  %v1410_v50 = vpop.f32.mrf.mxu1 }
 0x11d   : > { %v1387_v52 = vpop.f32.mrf.mxu0  ;;  %v1411_v54 = vpop.f32.mrf.mxu1 }
 0x11e   : > { %v1388_v55 = vadd.f32 %v1387_v52, %v1386_v49  ;;  %v1412_v56 = vadd.f32 %v1411_v54, %v1410_v50  ;;  %v447_v49 = vld [vmem:[#allocation2 + $0x78] sm:$0xff] }
 0x11f   : > { %v1389_v57 = vpop.f32.mrf.mxu0  ;;  %v1413_v58 = vpop.f32.mrf.mxu1 }
 0x120   : > { %v770_v59 = vadd.f32 %v1388_v55, %v433_v51  ;;  %v778_v60 = vadd.f32 %v1412_v56, %v441_v53 }
 0x121   : > { %v1390_v62 = vpop.f32.mrf.mxu0  ;;  %v1414_v0 = vpop.f32.mrf.mxu1 }
 0x122   : > { %786 = vst [vmem:[#allocation2 + $0x30] sm:$0xff] %v770_v59  ;;  %794 = vst [vmem:[#allocation2 + $0x40] sm:$0xff] %v778_v60  ;;  %v1391_v1 = vadd.f32 %v1390_v62, %v1389_v57  ;;  %v1415_v2 = vadd.f32 %v1414_v0, %v1413_v58  ;;  %v440_v57 = vld [vmem:[#allocation2 + $0x48] sm:$0xff] }
 0x123   : > { %v1392_v3 = vpop.f32.mrf.mxu0  ;;  %v1416_v4 = vpop.f32.mrf.mxu1  ;;  %v448_v59 = vld [vmem:[#allocation2 + $0x28] sm:$0xff] }
 0x124   : > { %v771_v5 = vadd.f32 %v1391_v1, %v434_v61  ;;  %v779_v6 = vadd.f32 %v1415_v2, %v442_v63 }
 0x125   : > { %v1393_v8 = vpop.f32.mrf.mxu0  ;;  %v1417_v10 = vpop.f32.mrf.mxu1 }
 0x126   : > { %787 = vst [vmem:[#allocation2] sm:$0xff] %v771_v5  ;;  %795 = vst [vmem:[#allocation2 + $0x20] sm:$0xff] %v779_v6  ;;  %v1394_v11 = vadd.f32 %v1393_v8, %v1392_v3  ;;  %v1418_v12 = vadd.f32 %v1417_v10, %v1416_v4 }
 0x127   : > { %v1395_v13 = vpop.f32.mrf.mxu0  ;;  %v1419_v14 = vpop.f32.mrf.mxu1 }
 0x128   : > { %v772_v15 = vadd.f32 %v1394_v11, %v435_v7  ;;  %v780_v16 = vadd.f32 %v1418_v12, %v443_v9 }
 0x129   : > { %v1396_v18 = vpop.f32.mrf.mxu0  ;;  %v1420_v20 = vpop.f32.mrf.mxu1 }
 0x12a   : > { %788 = vst [vmem:[#allocation2 + $0x58] sm:$0xff] %v772_v15  ;;  %796 = vst [vmem:[#allocation2 + $0x10] sm:$0xff] %v780_v16  ;;  %v1397_v21 = vadd.f32 %v1396_v18, %v1395_v13  ;;  %v1421_v22 = vadd.f32 %v1420_v20, %v1419_v14 }
 0x12b   : > { %v1398_v23 = vpop.f32.mrf.mxu0  ;;  %v1422_v24 = vpop.f32.mrf.mxu1 }
 0x12c   : > { %v773_v25 = vadd.f32 %v1397_v21, %v436_v17  ;;  %v781_v26 = vadd.f32 %v1421_v22, %v444_v19 }
 0x12d   : > { %v1399_v28 = vpop.f32.mrf.mxu0  ;;  %v1423_v30 = vpop.f32.mrf.mxu1 }
 0x12e   : > { %789 = vst [vmem:[#allocation2 + $0x18] sm:$0xff] %v773_v25  ;;  %797 = vst [vmem:[#allocation2 + $0x38] sm:$0xff] %v781_v26  ;;  %v1400_v31 = vadd.f32 %v1399_v28, %v1398_v23  ;;  %v1424_v32 = vadd.f32 %v1423_v30, %v1422_v24 }
 0x12f   : > { %v1401_v33 = vpop.f32.mrf.mxu0  ;;  %v1425_v34 = vpop.f32.mrf.mxu1 }
 0x130   : > { %v774_v35 = vadd.f32 %v1400_v31, %v437_v27  ;;  %v782_v36 = vadd.f32 %v1424_v32, %v445_v29 }
 0x131   : > { %v1402_v38 = vpop.f32.mrf.mxu0  ;;  %v1426_v40 = vpop.f32.mrf.mxu1 }
 0x132   : > { %790 = vst [vmem:[#allocation2 + $0x50] sm:$0xff] %v774_v35  ;;  %798 = vst [vmem:[#allocation2 + $0x60] sm:$0xff] %v782_v36  ;;  %v1403_v41 = vadd.f32 %v1402_v38, %v1401_v33  ;;  %v1427_v42 = vadd.f32 %v1426_v40, %v1425_v34 }
 0x133   : > { %v1404_v43 = vpop.f32.mrf.mxu0  ;;  %v1428_v44 = vpop.f32.mrf.mxu1 }
 0x134   : > { %v775_v45 = vadd.f32 %v1403_v41, %v438_v37  ;;  %v783_v46 = vadd.f32 %v1427_v42, %v446_v39 }
 0x135   : > { %v1405_v48 = vpop.f32.mrf.mxu0  ;;  %v1429_v50 = vpop.f32.mrf.mxu1 }
 0x136   : > { %791 = vst [vmem:[#allocation2 + $0x68] sm:$0xff] %v775_v45  ;;  %799 = vst [vmem:[#allocation2 + $0x70] sm:$0xff] %v783_v46  ;;  %v1406_v51 = vadd.f32 %v1405_v48, %v1404_v43  ;;  %v1430_v52 = vadd.f32 %v1429_v50, %v1428_v44 }
 0x137   : > { %v1407_v53 = vpop.f32.mrf.mxu0  ;;  %v1431_v54 = vpop.f32.mrf.mxu1 }
 0x138   : > { %v776_v55 = vadd.f32 %v1406_v51, %v439_v47  ;;  %v784_v56 = vadd.f32 %v1430_v52, %v447_v49 }
 0x139   : > { %v1408_v58 = vpop.f32.mrf.mxu0  ;;  %v1432_v60 = vpop.f32.mrf.mxu1 }
 0x13a   : > { %792 = vst [vmem:[#allocation2 + $0x8] sm:$0xff] %v776_v55  ;;  %800 = vst [vmem:[#allocation2 + $0x78] sm:$0xff] %v784_v56  ;;  %v1409_v61 = vadd.f32 %v1408_v58, %v1407_v53  ;;  %v1433_v62 = vadd.f32 %v1432_v60, %v1431_v54  ;;  %805 = sbr.rel (%p1366_p13) target bundleno = 584 (0x248), region = 90 }
 0x13c   : > { %v777_v63 = vadd.f32 %v1409_v61, %v440_v57  ;;  %v785_v0 = vadd.f32 %v1433_v62, %v448_v59 }
 0x13e   : > { %793 = vst [vmem:[#allocation2 + $0x48] sm:$0xff] %v777_v63  ;;  %801 = vst [vmem:[#allocation2 + $0x28] sm:$0xff] %v785_v0 }
 0x13f   : > { %v869_v1 = vld [vmem:[%s2124_s4 + $0x78] sm:$0xff]  ;;  %v868_v3 = vld [vmem:[%s2124_s4 + $0x70] sm:$0xff]  ;;  %v867_v5 = vld [vmem:[%s2124_s4 + $0x68] sm:$0xff] }
 0x140   : > { %v837_v2 = vld [vmem:[%s2123_s3 + $0x78] sm:$0xff]  ;;  %1498 = vmatprep.subr.mxu0 %v869_v1  ;;  %v836_v4 = vld [vmem:[%s2123_s3 + $0x70] sm:$0xff]  ;;  %v835_v6 = vld [vmem:[%s2123_s3 + $0x68] sm:$0xff] }
 0x141   : > { %1554 = vmatprep.subr.mxu1 %v837_v2  ;;  %1499 = vmatpush3.msra.mxu0 %v869_v1  ;;  %v866_v7 = vld [vmem:[%s2124_s4 + $0x60] sm:$0xff]  ;;  %v865_v9 = vld [vmem:[%s2124_s4 + $0x58] sm:$0xff]  ;;  %v864_v11 = vld [vmem:[%s2124_s4 + $0x50] sm:$0xff] }
 0x142   : > { %1555 = vmatpush3.msra.mxu1 %v837_v2  ;;  %1500 = vmatprep.subr.mxu0 %v868_v3  ;;  %v834_v8 = vld [vmem:[%s2123_s3 + $0x60] sm:$0xff]  ;;  %v833_v10 = vld [vmem:[%s2123_s3 + $0x58] sm:$0xff]  ;;  %v832_v12 = vld [vmem:[%s2123_s3 + $0x50] sm:$0xff] }
 0x143   : > { %1556 = vmatprep.subr.mxu1 %v836_v4  ;;  %1501 = vmatpush3.msra.mxu0 %v868_v3  ;;  %v863_v13 = vld [vmem:[%s2124_s4 + $0x48] sm:$0xff]  ;;  %v862_v15 = vld [vmem:[%s2124_s4 + $0x40] sm:$0xff]  ;;  %v861_v17 = vld [vmem:[%s2124_s4 + $0x38] sm:$0xff] }
 0x144   : > { %1557 = vmatpush3.msra.mxu1 %v836_v4  ;;  %1502 = vmatprep.subr.mxu0 %v867_v5  ;;  %v831_v14 = vld [vmem:[%s2123_s3 + $0x48] sm:$0xff]  ;;  %v830_v16 = vld [vmem:[%s2123_s3 + $0x40] sm:$0xff]  ;;  %v829_v18 = vld [vmem:[%s2123_s3 + $0x38] sm:$0xff] }
 0x145   : > { %1558 = vmatprep.subr.mxu1 %v835_v6  ;;  %1503 = vmatpush3.msra.mxu0 %v867_v5  ;;  %v860_v19 = vld [vmem:[%s2124_s4 + $0x30] sm:$0xff]  ;;  %v859_v21 = vld [vmem:[%s2124_s4 + $0x28] sm:$0xff]  ;;  %v858_v23 = vld [vmem:[%s2124_s4 + $0x20] sm:$0xff] }
 0x146   : > { %1559 = vmatpush3.msra.mxu1 %v835_v6  ;;  %1504 = vmatprep.subr.mxu0 %v866_v7  ;;  %v828_v20 = vld [vmem:[%s2123_s3 + $0x30] sm:$0xff]  ;;  %v827_v22 = vld [vmem:[%s2123_s3 + $0x28] sm:$0xff]  ;;  %v826_v24 = vld [vmem:[%s2123_s3 + $0x20] sm:$0xff] }
 0x147   : > { %1560 = vmatprep.subr.mxu1 %v834_v8  ;;  %1505 = vmatpush3.msra.mxu0 %v866_v7  ;;  %v857_v25 = vld [vmem:[%s2124_s4 + $0x18] sm:$0xff]  ;;  %v856_v27 = vld [vmem:[%s2124_s4 + $0x10] sm:$0xff]  ;;  %v855_v29 = vld [vmem:[%s2124_s4 + $0x8] sm:$0xff] }
 0x148   : > { %1561 = vmatpush3.msra.mxu1 %v834_v8  ;;  %1506 = vmatprep.subr.mxu0 %v865_v9  ;;  %v825_v26 = vld [vmem:[%s2123_s3 + $0x18] sm:$0xff]  ;;  %v824_v28 = vld [vmem:[%s2123_s3 + $0x10] sm:$0xff]  ;;  %v823_v30 = vld [vmem:[%s2123_s3 + $0x8] sm:$0xff] }
 0x149   : > { %1562 = vmatprep.subr.mxu1 %v833_v10  ;;  %1507 = vmatpush3.msra.mxu0 %v865_v9  ;;  %v854_v31 = vld [vmem:[%s2124_s4] sm:$0xff]  ;;  %v838_v33 = vld [vmem:[#allocation2 + $0x30] sm:$0xff]  ;;  %v807_v36 = vld [vmem:[%s1907_s18 + $0x8] sm:$0xff] }
 0x14a   : > { %1563 = vmatpush3.msra.mxu1 %v833_v10  ;;  %1508 = vmatprep.subr.mxu0 %v864_v11  ;;  %v822_v32 = vld [vmem:[%s2123_s3] sm:$0xff]  ;;  %v840_v37 = vld [vmem:[#allocation2 + $0x58] sm:$0xff]  ;;  %v808_v38 = vld [vmem:[%s1907_s18 + $0x10] sm:$0xff] }
 0x14b   : > { %1564 = vmatprep.subr.mxu1 %v832_v12  ;;  %1509 = vmatpush3.msra.mxu0 %v864_v11  ;;  %v806_v34 = vld [vmem:[%s1907_s18] sm:$0xff]  ;;  %v841_v39 = vld [vmem:[#allocation2 + $0x18] sm:$0xff]  ;;  %v842_v41 = vld [vmem:[#allocation2 + $0x50] sm:$0xff] }
 0x14c   : > { %1565 = vmatpush3.msra.mxu1 %v832_v12  ;;  %1510 = vmatprep.subr.mxu0 %v863_v13  ;;  %v839_v35 = vld [vmem:[#allocation2] sm:$0xff]  ;;  %v809_v40 = vld [vmem:[%s1907_s18 + $0x18] sm:$0xff]  ;;  %v843_v43 = vld [vmem:[#allocation2 + $0x68] sm:$0xff] }
 0x14d   : > { %1566 = vmatprep.subr.mxu1 %v831_v14  ;;  %1511 = vmatpush3.msra.mxu0 %v863_v13  ;;  %v810_v42 = vld [vmem:[%s1907_s18 + $0x20] sm:$0xff]  ;;  %v811_v44 = vld [vmem:[%s1907_s18 + $0x28] sm:$0xff]  ;;  %v812_v46 = vld [vmem:[%s1907_s18 + $0x30] sm:$0xff] }
 0x14e   : > { %1567 = vmatpush3.msra.mxu1 %v831_v14  ;;  %1512 = vmatprep.subr.mxu0 %v862_v15  ;;  %v844_v45 = vld [vmem:[#allocation2 + $0x8] sm:$0xff]  ;;  %v813_v48 = vld [vmem:[%s1907_s18 + $0x38] sm:$0xff]  ;;  %v846_v49 = vld [vmem:[#allocation2 + $0x40] sm:$0xff] }
 0x14f   : > { %1568 = vmatprep.subr.mxu1 %v830_v16  ;;  %1513 = vmatpush3.msra.mxu0 %v862_v15  ;;  %v845_v47 = vld [vmem:[#allocation2 + $0x48] sm:$0xff]  ;;  %v814_v50 = vld [vmem:[%s1907_s18 + $0x40] sm:$0xff]  ;;  %v848_v53 = vld [vmem:[#allocation2 + $0x10] sm:$0xff] }
 0x150   : > { %1569 = vmatpush3.msra.mxu1 %v830_v16  ;;  %1514 = vmatprep.subr.mxu0 %v861_v17  ;;  %v847_v51 = vld [vmem:[#allocation2 + $0x20] sm:$0xff]  ;;  %v815_v52 = vld [vmem:[%s1907_s18 + $0x48] sm:$0xff]  ;;  %v816_v54 = vld [vmem:[%s1907_s18 + $0x50] sm:$0xff] }
 0x151   : > { %1570 = vmatprep.subr.mxu1 %v829_v18  ;;  %1515 = vmatpush3.msra.mxu0 %v861_v17  ;;  %v849_v55 = vld [vmem:[#allocation2 + $0x38] sm:$0xff]  ;;  %v850_v57 = vld [vmem:[#allocation2 + $0x60] sm:$0xff]  ;;  %v851_v59 = vld [vmem:[#allocation2 + $0x70] sm:$0xff] }
 0x152   : > { %1571 = vmatpush3.msra.mxu1 %v829_v18  ;;  %1516 = vmatprep.subr.mxu0 %v860_v19  ;;  %v817_v56 = vld [vmem:[%s1907_s18 + $0x58] sm:$0xff]  ;;  %v818_v58 = vld [vmem:[%s1907_s18 + $0x60] sm:$0xff]  ;;  %v819_v60 = vld [vmem:[%s1907_s18 + $0x68] sm:$0xff] }
 0x153   : > { %1572 = vmatprep.subr.mxu1 %v828_v20  ;;  %1517 = vmatpush3.msra.mxu0 %v860_v19  ;;  %v852_v61 = vld [vmem:[#allocation2 + $0x78] sm:$0xff]  ;;  %v820_v62 = vld [vmem:[%s1907_s18 + $0x70] sm:$0xff]  ;;  %v853_v63 = vld [vmem:[#allocation2 + $0x28] sm:$0xff] }
 0x154   : > { %1573 = vmatpush3.msra.mxu1 %v828_v20  ;;  %1518 = vmatprep.subr.mxu0 %v859_v21  ;;  %v821_v0 = vld [vmem:[%s1907_s18 + $0x78] sm:$0xff]  ;;  %v2065_v3 = vld [vmem:[%s2125_s5] ss:$0 sm:$0xff] }
 0x155   : > { %1574 = vmatprep.subr.mxu1 %v827_v22  ;;  %1519 = vmatpush3.msra.mxu0 %v859_v21 }
 0x156   : > { %1575 = vmatpush3.msra.mxu1 %v827_v22  ;;  %1520 = vmatprep.subr.mxu0 %v858_v23 }
 0x157   : > { %1576 = vmatprep.subr.mxu1 %v826_v24  ;;  %1521 = vmatpush3.msra.mxu0 %v858_v23 }
 0x158   : > { %1577 = vmatpush3.msra.mxu1 %v826_v24  ;;  %1522 = vmatprep.subr.mxu0 %v857_v25 }
 0x159   : > { %1578 = vmatprep.subr.mxu1 %v825_v26  ;;  %1523 = vmatpush3.msra.mxu0 %v857_v25 }
 0x15a   : > { %1579 = vmatpush3.msra.mxu1 %v825_v26  ;;  %1524 = vmatprep.subr.mxu0 %v856_v27 }
 0x15b   : > { %1580 = vmatprep.subr.mxu1 %v824_v28  ;;  %1525 = vmatpush3.msra.mxu0 %v856_v27 }
 0x15c   : > { %1581 = vmatpush3.msra.mxu1 %v824_v28  ;;  %1526 = vmatprep.subr.mxu0 %v855_v29 }
 0x15d   : > { %1582 = vmatprep.subr.mxu1 %v823_v30  ;;  %1527 = vmatpush3.msra.mxu0 %v855_v29 }
 0x15e   : > { %1583 = vmatpush3.msra.mxu1 %v823_v30  ;;  %1528 = vmatprep.subr.mxu0 %v854_v31 }
 0x15f   : > { %1584 = vmatprep.subr.mxu1 %v822_v32  ;;  %1529 = vmatpush3.msra.mxu0 %v854_v31 }
 0x160   : > { %1530 = vmatprep.mubr.f32.mxu0 %v838_v33  ;;  %1585 = vmatpush3.msra.mxu1 %v822_v32 }
 0x161   : > { %1586 = vmatprep.mubr.f32.mxu1 %v806_v34  ;;  %1531 = vmatmul.mubr.f32.vlgmr.msra.gmra.mxu0 %v839_v35 }
 0x162   : > { %1587 = vmatmul.mubr.f32.vlgmr.msra.gmra.mxu1 %v807_v36  ;;  %1533 = vmatprep.mubr.f32.mxu0 %v840_v37 }
 0x163   : > { %1589 = vmatprep.mubr.f32.mxu1 %v808_v38 }
 0x165   : > { %1534 = vmatmul.mubr.f32.gmra.mxu0 %v841_v39 }
 0x166   : > { %1590 = vmatmul.mubr.f32.gmra.mxu1 %v809_v40  ;;  %1536 = vmatprep.mubr.f32.mxu0 %v842_v41 }
 0x167   : > { %1592 = vmatprep.mubr.f32.mxu1 %v810_v42 }
 0x169   : > { %1537 = vmatmul.mubr.f32.gmra.mxu0 %v843_v43 }
 0x16a   : > { %1593 = vmatmul.mubr.f32.gmra.mxu1 %v811_v44  ;;  %1539 = vmatprep.mubr.f32.mxu0 %v844_v45 }
 0x16b   : > { %1595 = vmatprep.mubr.f32.mxu1 %v812_v46 }
 0x16d   : > { %1540 = vmatmul.mubr.f32.gmra.mxu0 %v845_v47 }
 0x16e   : > { %1596 = vmatmul.mubr.f32.gmra.mxu1 %v813_v48  ;;  %1542 = vmatprep.mubr.f32.mxu0 %v846_v49 }
 0x16f   : > { %1598 = vmatprep.mubr.f32.mxu1 %v814_v50 }
 0x171   : > { %1543 = vmatmul.mubr.f32.gmra.mxu0 %v847_v51 }
 0x172   : > { %1599 = vmatmul.mubr.f32.gmra.mxu1 %v815_v52  ;;  %1545 = vmatprep.mubr.f32.mxu0 %v848_v53 }
 0x173   : > { %1601 = vmatprep.mubr.f32.mxu1 %v816_v54 }
 0x175   : > { %1546 = vmatmul.mubr.f32.gmra.mxu0 %v849_v55 }
 0x176   : > { %1602 = vmatmul.mubr.f32.gmra.mxu1 %v817_v56  ;;  %1548 = vmatprep.mubr.f32.mxu0 %v850_v57 }
 0x177   : > { %1604 = vmatprep.mubr.f32.mxu1 %v818_v58 }
 0x179   : > { %1549 = vmatmul.mubr.f32.gmra.mxu0 %v851_v59 }
 0x17a   : > { %1605 = vmatmul.mubr.f32.gmra.mxu1 %v819_v60  ;;  %1551 = vmatprep.mubr.f32.mxu0 %v852_v61 }
 0x17b   : > { %1607 = vmatprep.mubr.f32.mxu1 %v820_v62 }
 0x17d   : > { %1552 = vmatmul.mubr.f32.gmra.mxu0 %v853_v63 }
 0x17e   : > { %1608 = vmatmul.mubr.f32.gmra.mxu1 %v821_v0 }
 0x221   : > { %v1532_v1 = vpop.f32.mrf.mxu0 }
 0x222   : > { %v1588_v2 = vpop.f32.mrf.mxu1 }
 0x223   : > { %v1087_v4 = vadd.f32 %v1588_v2, %v1532_v1  ;;  %v936_v5 = vpop.f32.mrf.mxu0 }
 0x224   : > { %v1081_v6 = vpop.f32.mrf.mxu1 }
 0x225   : > { %v1168_v7 = vadd.f32 %v2065_v3, %v1087_v4  ;;  %v1082_v8 = vadd.f32 %v1081_v6, %v936_v5  ;;  %v1535_v9 = vpop.f32.mrf.mxu0 }
 0x226   : > { %v1591_v10 = vpop.f32.mrf.mxu1 }
 0x227   : > { %v1184_v11 = vmax.f32 %v1168_v7, 0.0  ;;  %v1167_v12 = vadd.f32 %v2065_v3, %v1082_v8  ;;  %v1097_v13 = vadd.f32 %v1591_v10, %v1535_v9  ;;  %v946_v14 = vpop.f32.mrf.mxu0 }
 0x228   : > { %v1091_v15 = vpop.f32.mrf.mxu1 }
 0x229   : > { %1200 = vst [vmem:[%s1912_s20 + $0x8] sm:$0xff] %v1184_v11  ;;  %v1183_v16 = vmax.f32 %v1167_v12, 0.0  ;;  %v1170_v17 = vadd.f32 %v2065_v3, %v1097_v13  ;;  %v1092_v18 = vadd.f32 %v1091_v15, %v946_v14  ;;  %v1538_v19 = vpop.f32.mrf.mxu0 }
 0x22a   : > { %v1594_v20 = vpop.f32.mrf.mxu1 }
 0x22b   : > { %1199 = vst [vmem:[%s1912_s20] sm:$0xff] %v1183_v16  ;;  %v1186_v21 = vmax.f32 %v1170_v17, 0.0  ;;  %v1169_v22 = vadd.f32 %v2065_v3, %v1092_v18  ;;  %v1107_v23 = vadd.f32 %v1594_v20, %v1538_v19  ;;  %v956_v24 = vpop.f32.mrf.mxu0 }
 0x22c   : > { %v1101_v25 = vpop.f32.mrf.mxu1 }
 0x22d   : > { %1202 = vst [vmem:[%s1912_s20 + $0x18] sm:$0xff] %v1186_v21  ;;  %v1185_v26 = vmax.f32 %v1169_v22, 0.0  ;;  %v1172_v27 = vadd.f32 %v2065_v3, %v1107_v23  ;;  %v1102_v28 = vadd.f32 %v1101_v25, %v956_v24  ;;  %v1541_v29 = vpop.f32.mrf.mxu0 }
 0x22e   : > { %v1597_v30 = vpop.f32.mrf.mxu1 }
 0x22f   : > { %1201 = vst [vmem:[%s1912_s20 + $0x10] sm:$0xff] %v1185_v26  ;;  %v1188_v31 = vmax.f32 %v1172_v27, 0.0  ;;  %v1171_v32 = vadd.f32 %v2065_v3, %v1102_v28  ;;  %v1117_v33 = vadd.f32 %v1597_v30, %v1541_v29  ;;  %v966_v34 = vpop.f32.mrf.mxu0 }
 0x230   : > { %v1111_v35 = vpop.f32.mrf.mxu1 }
 0x231   : > { %1204 = vst [vmem:[%s1912_s20 + $0x28] sm:$0xff] %v1188_v31  ;;  %v1187_v36 = vmax.f32 %v1171_v32, 0.0  ;;  %v1174_v37 = vadd.f32 %v2065_v3, %v1117_v33  ;;  %v1112_v38 = vadd.f32 %v1111_v35, %v966_v34  ;;  %v1544_v39 = vpop.f32.mrf.mxu0 }
 0x232   : > { %v1600_v40 = vpop.f32.mrf.mxu1 }
 0x233   : > { %1203 = vst [vmem:[%s1912_s20 + $0x20] sm:$0xff] %v1187_v36  ;;  %v1190_v41 = vmax.f32 %v1174_v37, 0.0  ;;  %v1173_v42 = vadd.f32 %v2065_v3, %v1112_v38  ;;  %v1127_v43 = vadd.f32 %v1600_v40, %v1544_v39  ;;  %v976_v44 = vpop.f32.mrf.mxu0 }
 0x234   : > { %v1121_v45 = vpop.f32.mrf.mxu1 }
 0x235   : > { %1206 = vst [vmem:[%s1912_s20 + $0x38] sm:$0xff] %v1190_v41  ;;  %v1189_v46 = vmax.f32 %v1173_v42, 0.0  ;;  %v1176_v47 = vadd.f32 %v2065_v3, %v1127_v43  ;;  %v1122_v48 = vadd.f32 %v1121_v45, %v976_v44  ;;  %v1547_v49 = vpop.f32.mrf.mxu0 }
 0x236   : > { %v1603_v50 = vpop.f32.mrf.mxu1 }
 0x237   : > { %1205 = vst [vmem:[%s1912_s20 + $0x30] sm:$0xff] %v1189_v46  ;;  %v1192_v51 = vmax.f32 %v1176_v47, 0.0  ;;  %v1175_v52 = vadd.f32 %v2065_v3, %v1122_v48  ;;  %v1137_v53 = vadd.f32 %v1603_v50, %v1547_v49  ;;  %v986_v54 = vpop.f32.mrf.mxu0 }
 0x238   : > { %v1131_v55 = vpop.f32.mrf.mxu1 }
 0x239   : > { %1208 = vst [vmem:[%s1912_s20 + $0x48] sm:$0xff] %v1192_v51  ;;  %v1191_v56 = vmax.f32 %v1175_v52, 0.0  ;;  %v1178_v57 = vadd.f32 %v2065_v3, %v1137_v53  ;;  %v1132_v58 = vadd.f32 %v1131_v55, %v986_v54  ;;  %v1550_v59 = vpop.f32.mrf.mxu0 }
 0x23a   : > { %v1606_v60 = vpop.f32.mrf.mxu1 }
 0x23b   : > { %1207 = vst [vmem:[%s1912_s20 + $0x40] sm:$0xff] %v1191_v56  ;;  %v1194_v61 = vmax.f32 %v1178_v57, 0.0  ;;  %v1177_v62 = vadd.f32 %v2065_v3, %v1132_v58  ;;  %v1147_v63 = vadd.f32 %v1606_v60, %v1550_v59  ;;  %v996_v0 = vpop.f32.mrf.mxu0 }
 0x23c   : > { %v1141_v1 = vpop.f32.mrf.mxu1 }
 0x23d   : > { %1210 = vst [vmem:[%s1912_s20 + $0x58] sm:$0xff] %v1194_v61  ;;  %v1193_v2 = vmax.f32 %v1177_v62, 0.0  ;;  %v1180_v4 = vadd.f32 %v2065_v3, %v1147_v63  ;;  %v1142_v5 = vadd.f32 %v1141_v1, %v996_v0  ;;  %v1553_v6 = vpop.f32.mrf.mxu0 }
 0x23e   : > { %v1609_v7 = vpop.f32.mrf.mxu1 }
 0x23f   : > { %1209 = vst [vmem:[%s1912_s20 + $0x50] sm:$0xff] %v1193_v2  ;;  %v1196_v8 = vmax.f32 %v1180_v4, 0.0  ;;  %v1179_v9 = vadd.f32 %v2065_v3, %v1142_v5  ;;  %v1157_v10 = vadd.f32 %v1609_v7, %v1553_v6  ;;  %v1006_v11 = vpop.f32.mrf.mxu0 }
 0x240   : > { %v1151_v12 = vpop.f32.mrf.mxu1 }
 0x241   : > { %1212 = vst [vmem:[%s1912_s20 + $0x68] sm:$0xff] %v1196_v8  ;;  %v1195_v13 = vmax.f32 %v1179_v9, 0.0  ;;  %v1182_v14 = vadd.f32 %v2065_v3, %v1157_v10  ;;  %v1152_v15 = vadd.f32 %v1151_v12, %v1006_v11 }
 0x243   : > { %1211 = vst [vmem:[%s1912_s20 + $0x60] sm:$0xff] %v1195_v13  ;;  %v1198_v16 = vmax.f32 %v1182_v14, 0.0  ;;  %v1181_v17 = vadd.f32 %v2065_v3, %v1152_v15 }
 0x245   : > { %1214 = vst [vmem:[%s1912_s20 + $0x78] sm:$0xff] %v1198_v16  ;;  %v1197_v18 = vmax.f32 %v1181_v17, 0.0 }
 0x247   : > { %1213 = vst [vmem:[%s1912_s20 + $0x70] sm:$0xff] %v1197_v18 }
 0x248 PF: > { %s16_s27 = sadd.s32 1, %s1778_s27   ;;  %s2127_s21 = smov %s1758_s22 }
 0x249   : > { %p13_p0 = scmp.ge.s32.totalorder %s16_s27, 8   ;;  %s2128_s22 = smov %s1867_s10 }
 0x24a   : > { %s2129_s23 = smov %s1770_s25  ;;  %s2130_s24 = smov %s1774_s26 }
 0x24b   : > { %s2131_s25 = smov %s2134_s28  ;;  %s2132_s26 = smov %s2138_s29 }
 0x24c   :  { %15 = sbr.rel (!%p13_p0) target bundleno = 4 (0x4), region = 131 }

</bundles_post_ra>
